<compile_context>
chip_gen: v7x
topology: tpu7x:2x2x1
jax: 0.10.0
libtpu: 0.0.40
codegen_flags: <defaults>
</compile_context>

<pallas_src>
import math
import functools

import jax
import jax.numpy as jnp
from jax.experimental import pallas as pl
from jax.experimental.pallas import tpu as pltpu

LANE = 128
SUBLANE = 8
MIN_GRID_STEPS = 4  # target >= 4 row-grid steps when the batch allows it


def _round_up(x, m):
    return ((x + m - 1) // m) * m


def _vmem_capacity_bytes():
    """Physical per-core VMEM; conservative 64 MiB (v7x) fallback."""
    cap = 64 * 1024 * 1024
    try:
        info = pltpu.get_tpu_info()
        cap = int(getattr(info, "vmem_capacity_bytes", cap))
    except Exception:
        pass
    return cap


def _vmem_need_bytes(tm, D, H, in_bytes, w_bytes, out_bytes, weight_bufs):
    """Conservative VMEM estimate: buffers use lane/sublane-padded tiles."""
    Dl, Hl = _round_up(D, LANE), _round_up(H, LANE)
    weights = weight_bufs * (_round_up(D, 16) * Hl + _round_up(H, 16) * Hl) * w_bytes
    x_bufs = 2 * tm * Dl * in_bytes                  # double-buffered f32 input rows
    o_bufs = 2 * tm * Hl * out_bytes                 # double-buffered output rows
    # in-kernel intermediates: bf16(x), f32 h, f32 y, bf16 h
    interm = tm * Dl * w_bytes + 2 * tm * Hl * 4 + tm * Hl * w_bytes
    return weights + x_bufs + o_bufs + interm


def _fit_tm(tm, D, H, in_bytes, w_bytes, out_bytes, weight_bufs, budget):
    """Shrink tm (halving) until the estimated VMEM need fits the budget."""
    while tm > SUBLANE and _vmem_need_bytes(
            tm, D, H, in_bytes, w_bytes, out_bytes, weight_bufs) > budget:
        tm //= 2
    return max(_round_up(tm, SUBLANE), SUBLANE)


def rho_kernel(x_ref, w1_ref, w2_ref, o_ref):
    # x_ref  : (TM, D)  row-block of features, original dtype (f32)
    # w1_ref : (D, H)   linear1 weight, transposed, compute dtype (resident)
    # w2_ref : (H, H)   linear2 weight, transposed, compute dtype (resident)
    # o_ref  : (TM, H)  output block (caller dtype)
    neg_slope = jnp.float32(0.1)

    # In-kernel f32 -> bf16 cast (VPU); avoids a materialized padded copy of x.
    x = x_ref[...].astype(w1_ref.dtype)

    # linear1 + LeakyReLU(0.1); bf16 operands, f32 accumulation on the MXU.
    h = jnp.dot(x, w1_ref[...], preferred_element_type=jnp.float32)
    h = jnp.maximum(h, neg_slope * h)   # max(v, a*v) valid since 0 < a < 1
    # dropout: identity in eval mode

    # linear2 + LeakyReLU(0.1)
    y = jnp.dot(h.astype(w2_ref.dtype), w2_ref[...],
                preferred_element_type=jnp.float32)
    y = jnp.maximum(y, neg_slope * y)

    o_ref[...] = y.astype(o_ref.dtype)


def prepare_rho_weights(w1, w2, compute_dtype=jnp.bfloat16):
    """One-time weight layout prep (hoisted out of the per-call forward).

    w1: [H, D] torch linear1.weight; w2: [H, H] torch linear2.weight.
    Returns (w1_t [D, H], w2_t [H, H]) cast to the MXU compute dtype.
    """
    return (jnp.asarray(w1).T.astype(compute_dtype),
            jnp.asarray(w2).T.astype(compute_dtype))


@functools.partial(jax.jit,
                   static_argnames=("tm", "out_dtype", "single_buffer_weights"))
def rho_forward(features, w1_t, w2_t, *, tm=1024, out_dtype=None,
                single_buffer_weights=True):
    """Eval-mode Rho forward.

    features : [N, D] float32 (read directly; cast to bf16 inside the kernel)
    w1_t     : [D, H] compute-dtype (= linear1.weight.T), H = D // 2
    w2_t     : [H, H] compute-dtype (= linear2.weight.T)
    returns  : [N, H] out_dtype (default: features.dtype)
    """
    N, D = features.shape
    Dw, H = w1_t.shape
    assert Dw == D and w2_t.shape == (H, H), (features.shape, w1_t.shape, w2_t.shape)
    if out_dtype is None:
        out_dtype = features.dtype

    in_bytes = features.dtype.itemsize
    w_bytes = w1_t.dtype.itemsize
    out_bytes = jnp.dtype(out_dtype).itemsize
    weight_bufs = 1 if single_buffer_weights else 2

    # Chip-derived VMEM budget: plan to half of physical, allow up to 3/4.
    cap = _vmem_capacity_bytes()
    budget = cap // 2
    vmem_limit = (cap * 3) // 4

    # Row tile: sublane-aligned, capped so the row grid has >= MIN_GRID_STEPS
    # steps (megacore sharding on v7x, DMA/compute overlap everywhere) while
    # staying >= 256 rows when the batch allows (HBM roofline), then shrunk to
    # fit the VMEM budget.
    row_cap = max(min(256, _round_up(N, SUBLANE)),
                  _round_up(pl.cdiv(N, MIN_GRID_STEPS), SUBLANE))
    tm = min(_round_up(tm, SUBLANE), row_cap)
    tm = _fit_tm(tm, D, H, in_bytes, w_bytes, out_bytes, weight_bufs, budget)

    grid = (pl.cdiv(N, tm),)  # ragged last block: stores masked to the N valid rows

    def _const_spec(shape):
        # Weights are grid-invariant; single-buffer them to free VMEM for tm.
        if single_buffer_weights:
            try:
                return pl.BlockSpec(shape, lambda i: (0, 0),
                                    pipeline_mode=pl.Buffered(1))
            except TypeError:
                pass
        return pl.BlockSpec(shape, lambda i: (0, 0))

    return pl.pallas_call(
        rho_kernel,
        out_shape=jax.ShapeDtypeStruct((N, H), out_dtype),
        grid_spec=pltpu.PrefetchScalarGridSpec(
            num_scalar_prefetch=0,
            grid=grid,
            in_specs=[
                pl.BlockSpec((tm, D), lambda i: (i, 0)),   # f32 rows; cast in-kernel
                _const_spec((D, H)),                       # resident W1ᵀ
                _const_spec((H, H)),                       # resident W2ᵀ
            ],
            out_specs=pl.BlockSpec((tm, H), lambda i: (i, 0)),
        ),
        compiler_params=pltpu.CompilerParams(
            dimension_semantics=("parallel",),
            vmem_limit_bytes=int(vmem_limit),
        ),
    )(features, w1_t, w2_t)


def xavier_uniform(key, shape):
    """Deterministic xavier_uniform_ for a PyTorch Linear weight (out, in)."""
    fan_out, fan_in = shape
    bound = math.sqrt(6.0 / (fan_in + fan_out))
    return jax.random.uniform(key, shape, minval=-bound, maxval=bound,
                              dtype=jnp.float32)


def rho_reference(features, w1, w2):
    """Pure-JAX reference with matching bf16 operand quantization, f32 accum."""
    def leaky(v):
        return jnp.maximum(v, 0.1 * v)
    xb = features.astype(jnp.bfloat16).astype(jnp.float32)
    w1b = w1.astype(jnp.bfloat16).astype(jnp.float32)
    w2b = w2.astype(jnp.bfloat16).astype(jnp.float32)
    h = leaky(xb @ w1b.T)
    h = h.astype(jnp.bfloat16).astype(jnp.float32)
    return leaky(h @ w2b.T)


if __name__ == "__main__":
    # Toy sizes for correctness; the kernel pays off for large-N batched readout.
    in_dim = 32
    hidden = in_dim // 2
    N = 20  # not a multiple of the row tile -> exercises the masked ragged tail

    key = jax.random.PRNGKey(0)
    k_x, k_w1, k_w2 = jax.random.split(key, 3)

    features = jax.random.normal(k_x, (N, in_dim), dtype=jnp.float32)
    w1 = xavier_uniform(k_w1, (hidden, in_dim))   # linear1.weight (out, in)
    w2 = xavier_uniform(k_w2, (hidden, hidden))   # linear2.weight (out, in)

    # One-time weight layout prep, hoisted out of the per-step forward.
    w1_t, w2_t = prepare_rho_weights(w1, w2)

    ref = rho_reference(features, w1, w2)

    def _run(**kw):
        # tm=8 forces a multi-step row grid even at this tiny demo size.
        out = jax.block_until_ready(rho_forward(features, w1_t, w2_t, tm=8, **kw))
        assert out.shape == ref.shape, (out.shape, ref.shape)
        err = float(jnp.max(jnp.abs(out - ref)))
        assert jnp.allclose(out, ref, atol=1e-2, rtol=1e-2), err
        return out

    try:
        out = _run(single_buffer_weights=True)     # v7x-friendly VMEM path
    except Exception:
        # Fallback if pl.Buffered(1) is unsupported on this jax/chip combo.
        out = _run(single_buffer_weights=False)

    print("KERNEL_OK")
</pallas_src>

<mosaic_0001>
module attributes {stable_mosaic.version = 11 : i64} {
  func.func @rho_kernel(%arg0: i32, %arg1: memref<8x32xf32, #tpu.memory_space<vmem>>, %arg2: memref<32x16xbf16, #tpu.memory_space<vmem>>, %arg3: memref<16x16xbf16, #tpu.memory_space<vmem>>, %arg4: memref<8x16xf32, #tpu.memory_space<vmem>>) attributes {dimension_semantics = [#tpu.dimension_semantics<parallel>], iteration_bounds = array<i64: 3>, scalar_prefetch = 0 : i64, scratch_operands = 0 : i64, tpu.core_type = #tpu.core_type<tc>, window_params = [{transform_indices = @transform_0, window_bounds = array<i64: 8, 32>}, {pipeline_mode = #tpu.pipeline_mode<synchronous>, transform_indices = @transform_1, window_bounds = array<i64: 32, 16>}, {pipeline_mode = #tpu.pipeline_mode<synchronous>, transform_indices = @transform_2, window_bounds = array<i64: 16, 16>}, {transform_indices = @transform_3, window_bounds = array<i64: 8, 16>}]} {
    %c0 = arith.constant 0 : index
    %c0_0 = arith.constant 0 : index
    %0 = vector.load %arg1[%c0, %c0_0] : memref<8x32xf32, #tpu.memory_space<vmem>>, vector<8x32xf32>
    %1 = arith.truncf %0 : vector<8x32xf32> to vector<8x32xbf16>
    %c0_1 = arith.constant 0 : index
    %c0_2 = arith.constant 0 : index
    %2 = vector.load %arg2[%c0_1, %c0_2] : memref<32x16xbf16, #tpu.memory_space<vmem>>, vector<32x16xbf16>
    %cst = arith.constant dense<0.000000e+00> : vector<8x16xf32>
    %3 = tpu.matmul %1, %2, %cst {dimension_numbers = #tpu.dot_dimension_numbers<[1], [0], [0], [1], [0, 0, 1, 1], [], []>} : vector<8x32xbf16>, vector<32x16xbf16>, vector<8x16xf32> -> vector<8x16xf32>
    %cst_3 = arith.constant 1.000000e-01 : f32
    %4 = vector.broadcast %cst_3 : f32 to vector<8x16xf32>
    %5 = arith.mulf %4, %3 : vector<8x16xf32>
    %6 = arith.maximumf %3, %5 : vector<8x16xf32>
    %7 = arith.truncf %6 : vector<8x16xf32> to vector<8x16xbf16>
    %c0_4 = arith.constant 0 : index
    %c0_5 = arith.constant 0 : index
    %8 = vector.load %arg3[%c0_4, %c0_5] : memref<16x16xbf16, #tpu.memory_space<vmem>>, vector<16x16xbf16>
    %cst_6 = arith.constant dense<0.000000e+00> : vector<8x16xf32>
    %9 = tpu.matmul %7, %8, %cst_6 {dimension_numbers = #tpu.dot_dimension_numbers<[1], [0], [0], [1], [0, 0, 1, 1], [], []>} : vector<8x16xbf16>, vector<16x16xbf16>, vector<8x16xf32> -> vector<8x16xf32>
    %cst_7 = arith.constant 1.000000e-01 : f32
    %10 = vector.broadcast %cst_7 : f32 to vector<8x16xf32>
    %11 = arith.mulf %10, %9 : vector<8x16xf32>
    %12 = arith.maximumf %9, %11 : vector<8x16xf32>
    %c0_8 = arith.constant 0 : index
    %c0_9 = arith.constant 0 : index
    %13 = vector.load %arg4[%c0_8, %c0_9] : memref<8x16xf32, #tpu.memory_space<vmem>>, vector<8x16xf32>
    tpu.vector_store %arg4[%c0_8, %c0_9], %12 {strides = array<i32>} : memref<8x16xf32, #tpu.memory_space<vmem>>, vector<8x16xf32>,
    return
  }
  func.func @transform_0(%arg0: i32) -> (i32, i32) {
    %c0_i32 = arith.constant 0 : i32
    %c0_i32_0 = arith.constant 0 : i32
    return %arg0, %c0_i32 : i32, i32
  }
  func.func @transform_1(%arg0: i32) -> (i32, i32) {
    %c0_i32 = arith.constant 0 : i32
    %c0_i32_0 = arith.constant 0 : i32
    %c0_i32_1 = arith.constant 0 : i32
    return %c0_i32, %c0_i32_0 : i32, i32
  }
  func.func @transform_2(%arg0: i32) -> (i32, i32) {
    %c0_i32 = arith.constant 0 : i32
    %c0_i32_0 = arith.constant 0 : i32
    %c0_i32_1 = arith.constant 0 : i32
    return %c0_i32, %c0_i32_0 : i32, i32
  }
  func.func @transform_3(%arg0: i32) -> (i32, i32) {
    %c0_i32 = arith.constant 0 : i32
    %c0_i32_0 = arith.constant 0 : i32
    return %arg0, %c0_i32 : i32, i32
  }
}

module attributes {stable_mosaic.version = 11 : i64} {
  func.func @rho_kernel(%arg0: i32, %arg1: memref<8x32xf32, #tpu.memory_space<vmem>>, %arg2: memref<32x16xbf16, #tpu.memory_space<vmem>>, %arg3: memref<16x16xbf16, #tpu.memory_space<vmem>>, %arg4: memref<8x16xf32, #tpu.memory_space<vmem>>) attributes {dimension_semantics = [#tpu.dimension_semantics<parallel>], iteration_bounds = array<i64: 3>, scalar_prefetch = 0 : i64, scratch_operands = 0 : i64, tpu.core_type = #tpu.core_type<tc>, window_params = [{transform_indices = @transform_0, window_bounds = array<i64: 8, 32>}, {pipeline_mode = #tpu.pipeline_mode<synchronous>, transform_indices = @transform_1, window_bounds = array<i64: 32, 16>}, {pipeline_mode = #tpu.pipeline_mode<synchronous>, transform_indices = @transform_2, window_bounds = array<i64: 16, 16>}, {transform_indices = @transform_3, window_bounds = array<i64: 8, 16>}]} {
    %c0 = arith.constant 0 : index
    %c0_0 = arith.constant 0 : index
    %0 = vector.load %arg1[%c0, %c0_0] : memref<8x32xf32, #tpu.memory_space<vmem>>, vector<8x32xf32>
    %1 = arith.truncf %0 : vector<8x32xf32> to vector<8x32xbf16>
    %c0_1 = arith.constant 0 : index
    %c0_2 = arith.constant 0 : index
    %2 = vector.load %arg2[%c0_1, %c0_2] : memref<32x16xbf16, #tpu.memory_space<vmem>>, vector<32x16xbf16>
    %cst = arith.constant dense<0.000000e+00> : vector<8x16xf32>
    %3 = tpu.matmul %1, %2, %cst {dimension_numbers = #tpu.dot_dimension_numbers<[1], [0], [0], [1], [0, 0, 1, 1], [], []>} : vector<8x32xbf16>, vector<32x16xbf16>, vector<8x16xf32> -> vector<8x16xf32>
    %cst_3 = arith.constant 1.000000e-01 : f32
    %4 = vector.broadcast %cst_3 : f32 to vector<8x16xf32>
    %5 = arith.mulf %4, %3 : vector<8x16xf32>
    %6 = arith.maximumf %3, %5 : vector<8x16xf32>
    %7 = arith.truncf %6 : vector<8x16xf32> to vector<8x16xbf16>
    %c0_4 = arith.constant 0 : index
    %c0_5 = arith.constant 0 : index
    %8 = vector.load %arg3[%c0_4, %c0_5] : memref<16x16xbf16, #tpu.memory_space<vmem>>, vector<16x16xbf16>
    %cst_6 = arith.constant dense<0.000000e+00> : vector<8x16xf32>
    %9 = tpu.matmul %7, %8, %cst_6 {dimension_numbers = #tpu.dot_dimension_numbers<[1], [0], [0], [1], [0, 0, 1, 1], [], []>} : vector<8x16xbf16>, vector<16x16xbf16>, vector<8x16xf32> -> vector<8x16xf32>
    %cst_7 = arith.constant 1.000000e-01 : f32
    %10 = vector.broadcast %cst_7 : f32 to vector<8x16xf32>
    %11 = arith.mulf %10, %9 : vector<8x16xf32>
    %12 = arith.maximumf %9, %11 : vector<8x16xf32>
    %c0_8 = arith.constant 0 : index
    %c0_9 = arith.constant 0 : index
    %13 = vector.load %arg4[%c0_8, %c0_9] : memref<8x16xf32, #tpu.memory_space<vmem>>, vector<8x16xf32>
    tpu.vector_store %arg4[%c0_8, %c0_9], %12 {strides = array<i32>} : memref<8x16xf32, #tpu.memory_space<vmem>>, vector<8x16xf32>,
    return
  }
  func.func @transform_0(%arg0: i32) -> (i32, i32) {
    %c0_i32 = arith.constant 0 : i32
    %c0_i32_0 = arith.constant 0 : i32
    return %arg0, %c0_i32 : i32, i32
  }
  func.func @transform_1(%arg0: i32) -> (i32, i32) {
    %c0_i32 = arith.constant 0 : i32
    %c0_i32_0 = arith.constant 0 : i32
    %c0_i32_1 = arith.constant 0 : i32
    return %c0_i32, %c0_i32_0 : i32, i32
  }
  func.func @transform_2(%arg0: i32) -> (i32, i32) {
    %c0_i32 = arith.constant 0 : i32
    %c0_i32_0 = arith.constant 0 : i32
    %c0_i32_1 = arith.constant 0 : i32
    return %c0_i32, %c0_i32_0 : i32, i32
  }
  func.func @transform_3(%arg0: i32) -> (i32, i32) {
    %c0_i32 = arith.constant 0 : i32
    %c0_i32_0 = arith.constant 0 : i32
    return %arg0, %c0_i32 : i32, i32
  }
}

</mosaic_0001>

<bundles_post_ra>
// kernel: rho_forward.1
= control target key start
LH: loop header
LB: loop body
LE: loop exit
PB: predicated region body
PF: predicated region fallthrough
CT: control target
= control target key end

     0   :  { %8 = vsyncpa [#allocation3], 0  ;;  %s493_s12 = smov 0   ;;  %s558_s0 = inlined_call_operand.vmem [shape: f32[20,32], index: 0, kind: input, shape index: {}]   ;;  %s559_s1 = inlined_call_operand.vmem [shape: bf16[32,16], index: 1, kind: input, shape index: {}]   ;;  %s560_s2 = inlined_call_operand.hbm [shape: bf16[16,16], index: 2, kind: input, shape index: {}]   ;;  %s561_s3 = inlined_call_operand.vmem [shape: f32[20,16], index: 3, kind: output, shape index: {}]  }
   0x1 LB: > { %s499_s13 = sadd.s32 4294967295, %s466_s12   ;;  %p369_p0 = scmp.ge.s32.totalorder %s466_s12, 1  ;;  %s466_s12 = sphi %s493_s12, %s14_s12  }
   0x2   : > { %p113_p1 = scmp.lt.s32.totalorder %s466_s12, 4  ;;  %s468_s14 = smov [#allocation2]  }
   0x3   : > { %s128_s15 = sshll.u32 %s468_s14, 4  ;;  %p562_p3 = scmp.eq.s32.totalorder %s499_s13, 0  ;;  %s129_s15 = int_to_ptr.vmem [resolvable:$true] %s128_s15 }
   0x4   : > { %p503_p2 = pnand %p369_p0, %p113_p1  ;;  %s428_s20 = scalar_lea.hbm %s560_s2, 128 }
   0x5   : > { %p429_p6 = scmp.ne.s32.totalorder %s560_s2, %s428_s20  ;;  %p435_p10 = scmp.lt.u32.totalorder %s428_s20, %s560_s2 }
   0x6   : > { %s564_s16 = scalar_select %p503_p2, 1, 0 }
   0x7   : > { %p406_p4 = pneg %p503_p2 }
   0x9   : > { %p512_p5 = pnand %p562_p3, %p406_p4 }
   0xb   : > { %p430_p7 = pneg %p512_p5 }
   0xd   : > { %p431_p8 = pnand %p430_p7, %p429_p6 }
   0xf   : > { %p432_p9 = pneg %p431_p8 }
  0x11   : > { %p437_p11 = pnand %p435_p10, %p432_p9 }
  0x13   : > { %440 = shalt.err (!%p437_p11)
}
  0x14   : > { %s441_s25 = scalar_lea.vmem %s129_s15, 128  ;;  %p449_p1 = scmp.lt.s32.totalorder %s129_s15, %s129_s15 }
  0x15   : > { %p442_p12 = scmp.ne.s32.totalorder %s129_s15, %s441_s25  ;;  %p450_p4 = scmp.lt.s32.totalorder %s441_s25, %s441_s25 }
  0x17   : > { %p444_p13 = pnand %p442_p12, %p430_p7  ;;  %p451_p3 = por %p450_p4, %p449_p1 }
  0x19   : > { %p445_p0 = pneg %p444_p13 }
  0x1b   : > { %p452_p2 = pnand %p451_p3, %p445_p0 }
  0x1d   : > { %455 = shalt.err (!%p452_p2)
}
  0x1e   : > { %s469_s26 = smov 64   ;;  %s470_s27 = smov 4  }
  0x1f   : > { %409 = dma.hbm_to_vmem [thread:$0]  (!%p512_p5), %s560_s2, 128, %s129_s15, [#allocation3], %s469_s26, %s469_s26, %s470_s27  }
  0x20   : > { %p566_p6 = scmp.ne.s32.totalorder %s564_s16, 0 }
  0x21   : > { %p567_p8 = scmp.eq.s32.totalorder (!%p566_p6), %s499_s13, 0 }
  0x22   : > { %151 = sbr.rel (%p566_p6) target bundleno = 487 (0x1e7), region = 32 }
  0x29   : > { %461 = dma.done.wait (%p567_p8), [#allocation3], 128   ;;  %p568_p7 = pmov %p567_p8 }
  0x2a   : > { %p173_p2 = scmp.lt.s32.totalorder %s499_s13, 2  ;;  %v471_v0 = vmov 0.0   ;;  %vm472_vm0 = vmmov 0   ;;  %v425_v1 = vld [vmem:[%s559_s1] sm:$0xff]   ;;  %v426_v2 = vld [vmem:[%s559_s1 + $0x8] sm:$0xff]   ;;  %vm200_vm1 = vcmask 261120  }
  0x2b   : > { %463 = vsyncadd (%p568_p7), [#allocation3], 4294967168  ;;  %388 = vmatprep.subr.bf16.mxu0 %v471_v0  ;;  %392 = vmatprep.mubr.msk.bf16.mxu0 %vm472_vm0, %v471_v0  ;;  %v427_v5 = vld [vmem:[#allocation2] sm:$0xff]   ;;  %vm255_vm2 = vcmask 130048  }
  0x2c   : > { %s570_s13 = smov (!%p173_p2, %s499_s13), 2  ;;  %396 = vmatprep.subr.bf16.mxu1 %v471_v0  ;;  %398 = vmatprep.mubr.msk.bf16.mxu1 %vm472_vm0, %v471_v0 }
  0x2d   : > { %s374_s30 = sshll.u32 %s570_s13, 3  ;;  %389 = vmatpush3.bf16.msra.mxu0 %v425_v1  ;;  %397 = vmatpush3.bf16.msra.mxu1 %v427_v5 }
  0x2e   : > { %s176_s6 = scalar_lea.vmem %s558_s0, %s374_s30  ;;  %390 = vmatprep.subr.bf16.mxu0 %v471_v0  ;;  %s180_s14 = scalar_lea.vmem %s561_s3, %s374_s30 }
  0x2f   : > { %v182_v3 = vld [vmem:[%s176_s6] sm:$0xff] }
  0x30   : > { %v183_v4 = vpack.c.bf16 %v182_v3, %v182_v3 }
  0x31   : > { %391 = vmatpush3.bf16.msra.mxu0 %v426_v2 }
  0x34   : > { %393 = vmatmul.mubr.msk.bf16.vlgmr.msra.gmra.mrb[0].mxu0 %vm200_vm1, %v183_v4 }
 0x107   : > { %v238_v6 = vpop.f32.mrb[0].mxu0 }
 0x108   : > { %v244_v7 = vmul.f32 0.1, %v238_v6  ;;  %v394_v8 = vpop.f32.mrb[1].mxu0 }
 0x109   : > { %v241_v9 = vpop.f32.mrb[2].mxu0 }
 0x10a   : > { %v245_v10 = vmax.f32 %v238_v6, %v244_v7  ;;  %v395_v11 = vpop.f32.mrb[3].mxu0 }
 0x10c   : > { %v246_v12 = vpack.c.bf16 %v245_v10, %v245_v10 }
 0x10e   : > { %399 = vmatmul.mubr.msk.bf16.vlgmr.msra.gmra.mrb[0].mxu1 %vm255_vm2, %v246_v12 }
 0x1e1   : > { %v293_v13 = vpop.f32.mrb[0].mxu1 }
 0x1e2   : > { %v299_v14 = vmul.f32 0.1, %v293_v13  ;;  %v400_v15 = vpop.f32.mrb[1].mxu1 }
 0x1e3   : > { %v296_v16 = vpop.f32.mrb[2].mxu1 }
 0x1e4   : > { %v300_v17 = vmax.f32 %v293_v13, %v299_v14  ;;  %v401_v18 = vpop.f32.mrb[3].mxu1 }
 0x1e6   : > { %301 = vst.msk [vmem:[%s180_s14] sm:$0xff] %vm255_vm2, %v300_v17 }
 0x1e7 PF: > { %s14_s12 = sadd.s32 1, %s466_s12  }
 0x1e8   : > { %p11_p3 = scmp.ge.s32.totalorder %s14_s12, 5  }
 0x1ea   :  { %13 = sbr.rel (!%p11_p3) target bundleno = 1 (0x1), region = 67 }
 0x1f1   :  { %321 = vsyncpa [#allocation3], 1 }
 0x1f2   :  { %323 = vsyncpa [#allocation3 + $0x1], 1 }

// kernel: rho_forward.1
= control target key start
LH: loop header
LB: loop body
LE: loop exit
PB: predicated region body
PF: predicated region fallthrough
CT: control target
= control target key end

     0   :  { %8 = vsyncpa [#allocation3], 0  ;;  %s493_s12 = smov 0   ;;  %s558_s0 = inlined_call_operand.vmem [shape: f32[20,32], index: 0, kind: input, shape index: {}]   ;;  %s559_s1 = inlined_call_operand.vmem [shape: bf16[32,16], index: 1, kind: input, shape index: {}]   ;;  %s560_s2 = inlined_call_operand.hbm [shape: bf16[16,16], index: 2, kind: input, shape index: {}]   ;;  %s561_s3 = inlined_call_operand.vmem [shape: f32[20,16], index: 3, kind: output, shape index: {}]  }
   0x1 LB: > { %s499_s13 = sadd.s32 4294967295, %s466_s12   ;;  %p369_p0 = scmp.ge.s32.totalorder %s466_s12, 1  ;;  %s466_s12 = sphi %s493_s12, %s14_s12  }
   0x2   : > { %p113_p1 = scmp.lt.s32.totalorder %s466_s12, 4  ;;  %s468_s14 = smov [#allocation2]  }
   0x3   : > { %s128_s15 = sshll.u32 %s468_s14, 4  ;;  %p562_p3 = scmp.eq.s32.totalorder %s499_s13, 0  ;;  %s129_s15 = int_to_ptr.vmem [resolvable:$true] %s128_s15 }
   0x4   : > { %p503_p2 = pnand %p369_p0, %p113_p1  ;;  %s428_s20 = scalar_lea.hbm %s560_s2, 128 }
   0x5   : > { %p429_p6 = scmp.ne.s32.totalorder %s560_s2, %s428_s20  ;;  %p435_p10 = scmp.lt.u32.totalorder %s428_s20, %s560_s2 }
   0x6   : > { %s564_s16 = scalar_select %p503_p2, 1, 0 }
   0x7   : > { %p406_p4 = pneg %p503_p2 }
   0x9   : > { %p512_p5 = pnand %p562_p3, %p406_p4 }
   0xb   : > { %p430_p7 = pneg %p512_p5 }
   0xd   : > { %p431_p8 = pnand %p430_p7, %p429_p6 }
   0xf   : > { %p432_p9 = pneg %p431_p8 }
  0x11   : > { %p437_p11 = pnand %p435_p10, %p432_p9 }
  0x13   : > { %440 = shalt.err (!%p437_p11)
}
  0x14   : > { %s441_s25 = scalar_lea.vmem %s129_s15, 128  ;;  %p449_p1 = scmp.lt.s32.totalorder %s129_s15, %s129_s15 }
  0x15   : > { %p442_p12 = scmp.ne.s32.totalorder %s129_s15, %s441_s25  ;;  %p450_p4 = scmp.lt.s32.totalorder %s441_s25, %s441_s25 }
  0x17   : > { %p444_p13 = pnand %p442_p12, %p430_p7  ;;  %p451_p3 = por %p450_p4, %p449_p1 }
  0x19   : > { %p445_p0 = pneg %p444_p13 }
  0x1b   : > { %p452_p2 = pnand %p451_p3, %p445_p0 }
  0x1d   : > { %455 = shalt.err (!%p452_p2)
}
  0x1e   : > { %s469_s26 = smov 64   ;;  %s470_s27 = smov 4  }
  0x1f   : > { %409 = dma.hbm_to_vmem [thread:$0]  (!%p512_p5), %s560_s2, 128, %s129_s15, [#allocation3], %s469_s26, %s469_s26, %s470_s27  }
  0x20   : > { %p566_p6 = scmp.ne.s32.totalorder %s564_s16, 0 }
  0x21   : > { %p567_p8 = scmp.eq.s32.totalorder (!%p566_p6), %s499_s13, 0 }
  0x22   : > { %151 = sbr.rel (%p566_p6) target bundleno = 487 (0x1e7), region = 32 }
  0x29   : > { %461 = dma.done.wait (%p567_p8), [#allocation3], 128   ;;  %p568_p7 = pmov %p567_p8 }
  0x2a   : > { %p173_p2 = scmp.lt.s32.totalorder %s499_s13, 2  ;;  %v471_v0 = vmov 0.0   ;;  %vm472_vm0 = vmmov 0   ;;  %v425_v1 = vld [vmem:[%s559_s1] sm:$0xff]   ;;  %v426_v2 = vld [vmem:[%s559_s1 + $0x8] sm:$0xff]   ;;  %vm200_vm1 = vcmask 261120  }
  0x2b   : > { %463 = vsyncadd (%p568_p7), [#allocation3], 4294967168  ;;  %388 = vmatprep.subr.bf16.mxu0 %v471_v0  ;;  %392 = vmatprep.mubr.msk.bf16.mxu0 %vm472_vm0, %v471_v0  ;;  %v427_v5 = vld [vmem:[#allocation2] sm:$0xff]   ;;  %vm255_vm2 = vcmask 130048  }
  0x2c   : > { %s570_s13 = smov (!%p173_p2, %s499_s13), 2  ;;  %396 = vmatprep.subr.bf16.mxu1 %v471_v0  ;;  %398 = vmatprep.mubr.msk.bf16.mxu1 %vm472_vm0, %v471_v0 }
  0x2d   : > { %s374_s30 = sshll.u32 %s570_s13, 3  ;;  %389 = vmatpush3.bf16.msra.mxu0 %v425_v1  ;;  %397 = vmatpush3.bf16.msra.mxu1 %v427_v5 }
  0x2e   : > { %s176_s6 = scalar_lea.vmem %s558_s0, %s374_s30  ;;  %390 = vmatprep.subr.bf16.mxu0 %v471_v0  ;;  %s180_s14 = scalar_lea.vmem %s561_s3, %s374_s30 }
  0x2f   : > { %v182_v3 = vld [vmem:[%s176_s6] sm:$0xff] }
  0x30   : > { %v183_v4 = vpack.c.bf16 %v182_v3, %v182_v3 }
  0x31   : > { %391 = vmatpush3.bf16.msra.mxu0 %v426_v2 }
  0x34   : > { %393 = vmatmul.mubr.msk.bf16.vlgmr.msra.gmra.mrb[0].mxu0 %vm200_vm1, %v183_v4 }
 0x107   : > { %v238_v6 = vpop.f32.mrb[0].mxu0 }
 0x108   : > { %v244_v7 = vmul.f32 0.1, %v238_v6  ;;  %v394_v8 = vpop.f32.mrb[1].mxu0 }
 0x109   : > { %v241_v9 = vpop.f32.mrb[2].mxu0 }
 0x10a   : > { %v245_v10 = vmax.f32 %v238_v6, %v244_v7  ;;  %v395_v11 = vpop.f32.mrb[3].mxu0 }
 0x10c   : > { %v246_v12 = vpack.c.bf16 %v245_v10, %v245_v10 }
 0x10e   : > { %399 = vmatmul.mubr.msk.bf16.vlgmr.msra.gmra.mrb[0].mxu1 %vm255_vm2, %v246_v12 }
 0x1e1   : > { %v293_v13 = vpop.f32.mrb[0].mxu1 }
 0x1e2   : > { %v299_v14 = vmul.f32 0.1, %v293_v13  ;;  %v400_v15 = vpop.f32.mrb[1].mxu1 }
 0x1e3   : > { %v296_v16 = vpop.f32.mrb[2].mxu1 }
 0x1e4   : > { %v300_v17 = vmax.f32 %v293_v13, %v299_v14  ;;  %v401_v18 = vpop.f32.mrb[3].mxu1 }
 0x1e6   : > { %301 = vst.msk [vmem:[%s180_s14] sm:$0xff] %vm255_vm2, %v300_v17 }
 0x1e7 PF: > { %s14_s12 = sadd.s32 1, %s466_s12  }
 0x1e8   : > { %p11_p3 = scmp.ge.s32.totalorder %s14_s12, 5  }
 0x1ea   :  { %13 = sbr.rel (!%p11_p3) target bundleno = 1 (0x1), region = 67 }
 0x1f1   :  { %321 = vsyncpa [#allocation3], 1 }
 0x1f2   :  { %323 = vsyncpa [#allocation3 + $0x1], 1 }

</bundles_post_ra>
